<compile_context>
chip_gen: v5e
topology: v5e:2x2
jax: 0.10.0
libtpu: 0.0.40
codegen_flags: <defaults>
</compile_context>

<pallas_src>
import functools

import jax
import jax.numpy as jnp
import numpy as np
from jax.experimental import pallas as pl
from jax.experimental.pallas import tpu as pltpu


def _darknet_kernel(x_ref, w1_ref, b1_ref, w2_ref, b2_ref, coord_ref, o_ref,
                    *, H, W, HW):
    """One image per grid step.

    x_ref    : (C1, HW)       input; channels on sublanes, H*W on lanes
    w1_ref   : (C2p, C1)      1x1 conv weight, BN0 scale folded, rows >= C2 zero
    b1_ref   : (C2p, 1)       folded BN0 bias
    w2_ref   : (9, C1, C2p)   3x3 conv weight per tap (t = ky*3+kx), BN1 folded
    b2_ref   : (C1, 1)        folded BN1 bias
    coord_ref: (2, HW) int32  row 0 = x coordinate, row 1 = y coordinate
    o_ref    : (C1, HW)       output
    """
    x = x_ref[...]                                              # (C1, HW)

    # ---- 1x1 conv (BN0 scale pre-folded) + bias + LeakyReLU(0.1) on the MXU.
    h = jnp.dot(w1_ref[...], x, preferred_element_type=jnp.float32)
    h = h + b1_ref[...]
    h = jnp.maximum(h, 0.1 * h)                                 # (C2p, HW)

    xs = coord_ref[0:1, :]                                      # (1, HW) int32
    ys = coord_ref[1:2, :]

    # ---- 3x3 "same" conv as 9 accumulating matmuls over shifted windows.
    #      Window t is pltpu.roll(h, -(dy*W+dx)) with out-of-image lanes
    #      zeroed by the validity predicate; the predicate covers exactly the
    #      lanes the roll wraps, so this matches zero padding bit-for-bit.
    acc = jnp.dot(w2_ref[4], h, preferred_element_type=jnp.float32)  # center tap
    for t in range(9):
        if t == 4:
            continue
        dy, dx = t // 3 - 1, t % 3 - 1
        off = dy * W + dx
        win = pltpu.roll(h, shift=(-off) % HW, axis=1)          # win[p]=h[p+off]
        conds = []
        if dx < 0:
            conds.append(xs >= -dx)
        elif dx > 0:
            conds.append(xs < W - dx)
        if dy < 0:
            conds.append(ys >= -dy)
        elif dy > 0:
            conds.append(ys < H - dy)
        valid = conds[0]
        for c in conds[1:]:
            valid = valid & c
        win = jnp.where(valid, win, 0.0)
        acc = acc + jnp.dot(w2_ref[t], win, preferred_element_type=jnp.float32)

    out = acc + b2_ref[...]
    out = jnp.maximum(out, 0.1 * out)

    # ---- residual add; full-tile, lane-dense store.
    o_ref[...] = (out + x).astype(o_ref.dtype)


def make_darknet_block(params, image_hw, eps=1e-5):
    """Returns a jitted apply(x_nchw) for fixed weights and feature-map size.

    All inference-time constants (BN folding, weight tap layout, coordinate
    rows) are built once here, so the per-call path is just the pallas_call.
    """
    H, W = image_hw
    HW = H * W
    C2, C1 = params["conv0_weight"].shape[:2]
    C2p = ((C2 + 7) // 8) * 8            # round channel dim up to a sublane tile

    assert HW % 128 == 0, "H*W must be a multiple of 128 (lane-aligned blocks)"
    assert C1 % 8 == 0, "C1 must be a multiple of 8 (sublane-aligned blocks)"

    # ---- fold eval-mode BatchNorm into conv weights / per-channel biases ----
    def fold_bn(gamma, beta, mean, var):
        scale = gamma / jnp.sqrt(var + eps)
        return scale, beta - mean * scale

    s1, b1 = fold_bn(params["bn0_weight"], params["bn0_bias"],
                     params["bn0_running_mean"], params["bn0_running_var"])
    s2, b2 = fold_bn(params["bn1_weight"], params["bn1_bias"],
                     params["bn1_running_mean"], params["bn1_running_var"])

    # 1x1 conv: scale folds along the output-channel axis (first axis of OIHW).
    w1 = params["conv0_weight"][:, :, 0, 0] * s1[:, None]            # (C2, C1)
    w1p = jnp.zeros((C2p, C1), jnp.float32).at[:C2].set(w1)
    b1p = jnp.zeros((C2p, 1), jnp.float32).at[:C2, 0].set(b1)

    # 3x3 conv: fold scale, lay out per tap as (9, C1, C2p); padded c2 cols = 0.
    w2 = params["conv1_weight"] * s2[:, None, None, None]            # (C1,C2,3,3)
    w2taps = jnp.transpose(w2, (2, 3, 0, 1)).reshape(9, C1, C2)      # (9,C1,C2)
    w2p = jnp.zeros((9, C1, C2p), jnp.float32).at[:, :, :C2].set(w2taps)
    b2c = b2.reshape(C1, 1).astype(jnp.float32)

    # In-image (x, y) coordinates, one int32 row each: 2*HW*4 bytes total.
    pos = np.arange(HW)
    coords = jnp.asarray(
        np.stack([pos % W, pos // W]).astype(np.int32))              # (2, HW)

    kernel = functools.partial(_darknet_kernel, H=H, W=W, HW=HW)

    @jax.jit
    def apply(x_nchw):
        N = x_nchw.shape[0]
        assert x_nchw.shape[1:] == (C1, H, W)
        x3 = x_nchw.reshape(N, C1, HW)           # free reshape, no transpose

        out3 = pl.pallas_call(
            kernel,
            out_shape=jax.ShapeDtypeStruct((N, C1, HW), x_nchw.dtype),
            grid=(N,),
            in_specs=[
                pl.BlockSpec((None, C1, HW), lambda n: (n, 0, 0)),   # x (per image)
                pl.BlockSpec((C2p, C1), lambda n: (0, 0)),           # w1 (resident)
                pl.BlockSpec((C2p, 1), lambda n: (0, 0)),            # b1
                pl.BlockSpec((9, C1, C2p), lambda n: (0, 0, 0)),     # w2 taps
                pl.BlockSpec((C1, 1), lambda n: (0, 0)),             # b2
                pl.BlockSpec((2, HW), lambda n: (0, 0)),             # coords
            ],
            out_specs=pl.BlockSpec((None, C1, HW), lambda n: (n, 0, 0)),
            compiler_params=pltpu.CompilerParams(
                dimension_semantics=("parallel",)),
        )(x3, w1p, b1p, w2p, b2c, coords)

        return out3.reshape(N, C1, H, W)

    return apply


def reference_darknet_block(x, params, eps=1e-5):
    """Pure-JAX reference matching the PyTorch module in eval mode (NCHW)."""
    def fold_bn(gamma, beta, mean, var):
        scale = gamma / jnp.sqrt(var + eps)
        return scale, beta - mean * scale

    s1, b1 = fold_bn(params["bn0_weight"], params["bn0_bias"],
                     params["bn0_running_mean"], params["bn0_running_var"])
    s2, b2 = fold_bn(params["bn1_weight"], params["bn1_bias"],
                     params["bn1_running_mean"], params["bn1_running_var"])

    y = jax.lax.conv_general_dilated(
        x, params["conv0_weight"], (1, 1), "VALID",
        dimension_numbers=("NCHW", "OIHW", "NCHW"))
    y = y * s1[None, :, None, None] + b1[None, :, None, None]
    y = jnp.where(y > 0, y, 0.1 * y)
    z = jax.lax.conv_general_dilated(
        y, params["conv1_weight"], (1, 1), ((1, 1), (1, 1)),
        dimension_numbers=("NCHW", "OIHW", "NCHW"))
    z = z * s2[None, :, None, None] + b2[None, :, None, None]
    z = jnp.where(z > 0, z, 0.1 * z)
    return z + x


if __name__ == "__main__":
    # Small shapes consistent with the module: nFilter1=8, nFilter2=4.
    N, C1, C2, H, W = 2, 8, 4, 16, 16

    key = jax.random.PRNGKey(0)
    keys = jax.random.split(key, 11)

    params = {
        "conv0_weight": 0.1 * jax.random.normal(keys[0], (C2, C1, 1, 1), jnp.float32),
        "conv1_weight": 0.1 * jax.random.normal(keys[1], (C1, C2, 3, 3), jnp.float32),
        "bn0_weight": 1.0 + 0.1 * jax.random.normal(keys[2], (C2,), jnp.float32),
        "bn0_bias": 0.1 * jax.random.normal(keys[3], (C2,), jnp.float32),
        "bn0_running_mean": 0.1 * jax.random.normal(keys[4], (C2,), jnp.float32),
        "bn0_running_var": 1.0 + 0.1 * jax.random.uniform(keys[5], (C2,), jnp.float32),
        "bn1_weight": 1.0 + 0.1 * jax.random.normal(keys[6], (C1,), jnp.float32),
        "bn1_bias": 0.1 * jax.random.normal(keys[7], (C1,), jnp.float32),
        "bn1_running_mean": 0.1 * jax.random.normal(keys[8], (C1,), jnp.float32),
        "bn1_running_var": 1.0 + 0.1 * jax.random.uniform(keys[9], (C1,), jnp.float32),
    }

    x = jax.random.normal(keys[10], (N, C1, H, W), jnp.float32)

    block = make_darknet_block(params, (H, W))
    out = jax.block_until_ready(block(x))
    ref = jax.block_until_ready(reference_darknet_block(x, params))
    np.testing.assert_allclose(np.asarray(out), np.asarray(ref),
                               rtol=1e-4, atol=1e-4)

    print("KERNEL_OK")
</pallas_src>

<mosaic_0001>
module attributes {stable_mosaic.version = 11 : i64} {
  func.func @_darknet_kernel(%arg0: i32, %arg1: memref<1x8x256xf32, #tpu.memory_space<vmem>>, %arg2: memref<8x8xf32, #tpu.memory_space<vmem>>, %arg3: memref<8x1xf32, #tpu.memory_space<vmem>>, %arg4: memref<9x8x8xf32, #tpu.memory_space<vmem>>, %arg5: memref<8x1xf32, #tpu.memory_space<vmem>>, %arg6: memref<2x256xi32, #tpu.memory_space<vmem>>, %arg7: memref<1x8x256xf32, #tpu.memory_space<vmem>>) attributes {dimension_semantics = [#tpu.dimension_semantics<parallel>], iteration_bounds = array<i64: 2>, scalar_prefetch = 0 : i64, scratch_operands = 0 : i64, tpu.core_type = #tpu.core_type<tc>, window_params = [{transform_indices = @transform_0, window_bounds = array<i64: 1, 8, 256>}, {pipeline_mode = #tpu.pipeline_mode<synchronous>, transform_indices = @transform_1, window_bounds = array<i64: 8, 8>}, {pipeline_mode = #tpu.pipeline_mode<synchronous>, transform_indices = @transform_2, window_bounds = array<i64: 8, 1>}, {pipeline_mode = #tpu.pipeline_mode<synchronous>, transform_indices = @transform_3, window_bounds = array<i64: 9, 8, 8>}, {pipeline_mode = #tpu.pipeline_mode<synchronous>, transform_indices = @transform_4, window_bounds = array<i64: 8, 1>}, {pipeline_mode = #tpu.pipeline_mode<synchronous>, transform_indices = @transform_5, window_bounds = array<i64: 2, 256>}, {transform_indices = @transform_6, window_bounds = array<i64: 1, 8, 256>}]} {
    %c0 = arith.constant 0 : index
    %c0_0 = arith.constant 0 : index
    %c0_1 = arith.constant 0 : index
    %0 = vector.load %arg1[%c0, %c0_0, %c0_1] : memref<1x8x256xf32, #tpu.memory_space<vmem>>, vector<1x8x256xf32>
    %1 = vector.shape_cast %0 : vector<1x8x256xf32> to vector<8x256xf32>
    %c0_2 = arith.constant 0 : index
    %c0_3 = arith.constant 0 : index
    %2 = vector.load %arg2[%c0_2, %c0_3] : memref<8x8xf32, #tpu.memory_space<vmem>>, vector<8x8xf32>
    %cst = arith.constant dense<0.000000e+00> : vector<8x256xf32>
    %3 = tpu.matmul %2, %1, %cst {dimension_numbers = #tpu.dot_dimension_numbers<[1], [0], [0], [1], [0, 0, 1, 1], [], []>} : vector<8x8xf32>, vector<8x256xf32>, vector<8x256xf32> -> vector<8x256xf32>
    %c0_4 = arith.constant 0 : index
    %c0_5 = arith.constant 0 : index
    %4 = vector.load %arg3[%c0_4, %c0_5] : memref<8x1xf32, #tpu.memory_space<vmem>>, vector<8x1xf32>
    %5 = vector.broadcast %4 : vector<8x1xf32> to vector<8x256xf32>
    %6 = arith.addf %3, %5 : vector<8x256xf32>
    %cst_6 = arith.constant 1.000000e-01 : f32
    %7 = vector.broadcast %cst_6 : f32 to vector<8x256xf32>
    %8 = arith.mulf %7, %6 : vector<8x256xf32>
    %9 = arith.maximumf %6, %8 : vector<8x256xf32>
    %c0_7 = arith.constant 0 : index
    %c0_8 = arith.constant 0 : index
    %10 = vector.load %arg6[%c0_7, %c0_8] : memref<2x256xi32, #tpu.memory_space<vmem>>, vector<1x256xi32>
    %c1 = arith.constant 1 : index
    %c0_9 = arith.constant 0 : index
    %11 = vector.load %arg6[%c1, %c0_9] : memref<2x256xi32, #tpu.memory_space<vmem>>, vector<1x256xi32>
    %c4 = arith.constant 4 : index
    %c0_10 = arith.constant 0 : index
    %c0_11 = arith.constant 0 : index
    %12 = vector.load %arg4[%c4, %c0_10, %c0_11] : memref<9x8x8xf32, #tpu.memory_space<vmem>>, vector<1x8x8xf32>
    %13 = vector.shape_cast %12 : vector<1x8x8xf32> to vector<8x8xf32>
    %cst_12 = arith.constant dense<0.000000e+00> : vector<8x256xf32>
    %14 = tpu.matmul %13, %9, %cst_12 {dimension_numbers = #tpu.dot_dimension_numbers<[1], [0], [0], [1], [0, 0, 1, 1], [], []>} : vector<8x8xf32>, vector<8x256xf32>, vector<8x256xf32> -> vector<8x256xf32>
    %c17_i32 = arith.constant 17 : i32
    %15 = tpu.dynamic_rotate %9 by %c17_i32 dim 1 : vector<8x256xf32>, i32 -> vector<8x256xf32>
    %c1_i32 = arith.constant 1 : i32
    %16 = vector.broadcast %c1_i32 : i32 to vector<1x256xi32>
    %17 = arith.cmpi sge, %10, %16 : vector<1x256xi32>
    %c1_i32_13 = arith.constant 1 : i32
    %18 = vector.broadcast %c1_i32_13 : i32 to vector<1x256xi32>
    %19 = arith.cmpi sge, %11, %18 : vector<1x256xi32>
    %20 = arith.andi %17, %19 : vector<1x256xi1>
    %cst_14 = arith.constant 0.000000e+00 : f32
    %21 = vector.shape_cast %20 : vector<1x256xi1> to vector<1x256xi1>
    %22 = vector.broadcast %21 : vector<1x256xi1> to vector<8x256xi1>
    %23 = vector.broadcast %cst_14 : f32 to vector<8x256xf32>
    %24 = arith.select %22, %15, %23 : vector<8x256xi1>, vector<8x256xf32>
    %c0_15 = arith.constant 0 : index
    %c0_16 = arith.constant 0 : index
    %c0_17 = arith.constant 0 : index
    %25 = vector.load %arg4[%c0_15, %c0_16, %c0_17] : memref<9x8x8xf32, #tpu.memory_space<vmem>>, vector<1x8x8xf32>
    %26 = vector.shape_cast %25 : vector<1x8x8xf32> to vector<8x8xf32>
    %cst_18 = arith.constant dense<0.000000e+00> : vector<8x256xf32>
    %27 = tpu.matmul %26, %24, %cst_18 {dimension_numbers = #tpu.dot_dimension_numbers<[1], [0], [0], [1], [0, 0, 1, 1], [], []>} : vector<8x8xf32>, vector<8x256xf32>, vector<8x256xf32> -> vector<8x256xf32>
    %28 = arith.addf %14, %27 : vector<8x256xf32>
    %c16_i32 = arith.constant 16 : i32
    %29 = tpu.dynamic_rotate %9 by %c16_i32 dim 1 : vector<8x256xf32>, i32 -> vector<8x256xf32>
    %c1_i32_19 = arith.constant 1 : i32
    %30 = vector.broadcast %c1_i32_19 : i32 to vector<1x256xi32>
    %31 = arith.cmpi sge, %11, %30 : vector<1x256xi32>
    %cst_20 = arith.constant 0.000000e+00 : f32
    %32 = vector.shape_cast %31 : vector<1x256xi1> to vector<1x256xi1>
    %33 = vector.broadcast %32 : vector<1x256xi1> to vector<8x256xi1>
    %34 = vector.broadcast %cst_20 : f32 to vector<8x256xf32>
    %35 = arith.select %33, %29, %34 : vector<8x256xi1>, vector<8x256xf32>
    %c1_21 = arith.constant 1 : index
    %c0_22 = arith.constant 0 : index
    %c0_23 = arith.constant 0 : index
    %36 = vector.load %arg4[%c1_21, %c0_22, %c0_23] : memref<9x8x8xf32, #tpu.memory_space<vmem>>, vector<1x8x8xf32>
    %37 = vector.shape_cast %36 : vector<1x8x8xf32> to vector<8x8xf32>
    %cst_24 = arith.constant dense<0.000000e+00> : vector<8x256xf32>
    %38 = tpu.matmul %37, %35, %cst_24 {dimension_numbers = #tpu.dot_dimension_numbers<[1], [0], [0], [1], [0, 0, 1, 1], [], []>} : vector<8x8xf32>, vector<8x256xf32>, vector<8x256xf32> -> vector<8x256xf32>
    %39 = arith.addf %28, %38 : vector<8x256xf32>
    %c15_i32 = arith.constant 15 : i32
    %40 = tpu.dynamic_rotate %9 by %c15_i32 dim 1 : vector<8x256xf32>, i32 -> vector<8x256xf32>
    %c15_i32_25 = arith.constant 15 : i32
    %41 = vector.broadcast %c15_i32_25 : i32 to vector<1x256xi32>
    %42 = arith.cmpi slt, %10, %41 : vector<1x256xi32>
    %c1_i32_26 = arith.constant 1 : i32
    %43 = vector.broadcast %c1_i32_26 : i32 to vector<1x256xi32>
    %44 = arith.cmpi sge, %11, %43 : vector<1x256xi32>
    %45 = arith.andi %42, %44 : vector<1x256xi1>
    %cst_27 = arith.constant 0.000000e+00 : f32
    %46 = vector.shape_cast %45 : vector<1x256xi1> to vector<1x256xi1>
    %47 = vector.broadcast %46 : vector<1x256xi1> to vector<8x256xi1>
    %48 = vector.broadcast %cst_27 : f32 to vector<8x256xf32>
    %49 = arith.select %47, %40, %48 : vector<8x256xi1>, vector<8x256xf32>
    %c2 = arith.constant 2 : index
    %c0_28 = arith.constant 0 : index
    %c0_29 = arith.constant 0 : index
    %50 = vector.load %arg4[%c2, %c0_28, %c0_29] : memref<9x8x8xf32, #tpu.memory_space<vmem>>, vector<1x8x8xf32>
    %51 = vector.shape_cast %50 : vector<1x8x8xf32> to vector<8x8xf32>
    %cst_30 = arith.constant dense<0.000000e+00> : vector<8x256xf32>
    %52 = tpu.matmul %51, %49, %cst_30 {dimension_numbers = #tpu.dot_dimension_numbers<[1], [0], [0], [1], [0, 0, 1, 1], [], []>} : vector<8x8xf32>, vector<8x256xf32>, vector<8x256xf32> -> vector<8x256xf32>
    %53 = arith.addf %39, %52 : vector<8x256xf32>
    %c1_i32_31 = arith.constant 1 : i32
    %54 = tpu.dynamic_rotate %9 by %c1_i32_31 dim 1 : vector<8x256xf32>, i32 -> vector<8x256xf32>
    %c1_i32_32 = arith.constant 1 : i32
    %55 = vector.broadcast %c1_i32_32 : i32 to vector<1x256xi32>
    %56 = arith.cmpi sge, %10, %55 : vector<1x256xi32>
    %cst_33 = arith.constant 0.000000e+00 : f32
    %57 = vector.shape_cast %56 : vector<1x256xi1> to vector<1x256xi1>
    %58 = vector.broadcast %57 : vector<1x256xi1> to vector<8x256xi1>
    %59 = vector.broadcast %cst_33 : f32 to vector<8x256xf32>
    %60 = arith.select %58, %54, %59 : vector<8x256xi1>, vector<8x256xf32>
    %c3 = arith.constant 3 : index
    %c0_34 = arith.constant 0 : index
    %c0_35 = arith.constant 0 : index
    %61 = vector.load %arg4[%c3, %c0_34, %c0_35] : memref<9x8x8xf32, #tpu.memory_space<vmem>>, vector<1x8x8xf32>
    %62 = vector.shape_cast %61 : vector<1x8x8xf32> to vector<8x8xf32>
    %cst_36 = arith.constant dense<0.000000e+00> : vector<8x256xf32>
    %63 = tpu.matmul %62, %60, %cst_36 {dimension_numbers = #tpu.dot_dimension_numbers<[1], [0], [0], [1], [0, 0, 1, 1], [], []>} : vector<8x8xf32>, vector<8x256xf32>, vector<8x256xf32> -> vector<8x256xf32>
    %64 = arith.addf %53, %63 : vector<8x256xf32>
    %c255_i32 = arith.constant 255 : i32
    %65 = tpu.dynamic_rotate %9 by %c255_i32 dim 1 : vector<8x256xf32>, i32 -> vector<8x256xf32>
    %c15_i32_37 = arith.constant 15 : i32
    %66 = vector.broadcast %c15_i32_37 : i32 to vector<1x256xi32>
    %67 = arith.cmpi slt, %10, %66 : vector<1x256xi32>
    %cst_38 = arith.constant 0.000000e+00 : f32
    %68 = vector.shape_cast %67 : vector<1x256xi1> to vector<1x256xi1>
    %69 = vector.broadcast %68 : vector<1x256xi1> to vector<8x256xi1>
    %70 = vector.broadcast %cst_38 : f32 to vector<8x256xf32>
    %71 = arith.select %69, %65, %70 : vector<8x256xi1>, vector<8x256xf32>
    %c5 = arith.constant 5 : index
    %c0_39 = arith.constant 0 : index
    %c0_40 = arith.constant 0 : index
    %72 = vector.load %arg4[%c5, %c0_39, %c0_40] : memref<9x8x8xf32, #tpu.memory_space<vmem>>, vector<1x8x8xf32>
    %73 = vector.shape_cast %72 : vector<1x8x8xf32> to vector<8x8xf32>
    %cst_41 = arith.constant dense<0.000000e+00> : vector<8x256xf32>
    %74 = tpu.matmul %73, %71, %cst_41 {dimension_numbers = #tpu.dot_dimension_numbers<[1], [0], [0], [1], [0, 0, 1, 1], [], []>} : vector<8x8xf32>, vector<8x256xf32>, vector<8x256xf32> -> vector<8x256xf32>
    %75 = arith.addf %64, %74 : vector<8x256xf32>
    %c241_i32 = arith.constant 241 : i32
    %76 = tpu.dynamic_rotate %9 by %c241_i32 dim 1 : vector<8x256xf32>, i32 -> vector<8x256xf32>
    %c1_i32_42 = arith.constant 1 : i32
    %77 = vector.broadcast %c1_i32_42 : i32 to vector<1x256xi32>
    %78 = arith.cmpi sge, %10, %77 : vector<1x256xi32>
    %c15_i32_43 = arith.constant 15 : i32
    %79 = vector.broadcast %c15_i32_43 : i32 to vector<1x256xi32>
    %80 = arith.cmpi slt, %11, %79 : vector<1x256xi32>
    %81 = arith.andi %78, %80 : vector<1x256xi1>
    %cst_44 = arith.constant 0.000000e+00 : f32
    %82 = vector.shape_cast %81 : vector<1x256xi1> to vector<1x256xi1>
    %83 = vector.broadcast %82 : vector<1x256xi1> to vector<8x256xi1>
    %84 = vector.broadcast %cst_44 : f32 to vector<8x256xf32>
    %85 = arith.select %83, %76, %84 : vector<8x256xi1>, vector<8x256xf32>
    %c6 = arith.constant 6 : index
    %c0_45 = arith.constant 0 : index
    %c0_46 = arith.constant 0 : index
    %86 = vector.load %arg4[%c6, %c0_45, %c0_46] : memref<9x8x8xf32, #tpu.memory_space<vmem>>, vector<1x8x8xf32>
    %87 = vector.shape_cast %86 : vector<1x8x8xf32> to vector<8x8xf32>
    %cst_47 = arith.constant dense<0.000000e+00> : vector<8x256xf32>
    %88 = tpu.matmul %87, %85, %cst_47 {dimension_numbers = #tpu.dot_dimension_numbers<[1], [0], [0], [1], [0, 0, 1, 1], [], []>} : vector<8x8xf32>, vector<8x256xf32>, vector<8x256xf32> -> vector<8x256xf32>
    %89 = arith.addf %75, %88 : vector<8x256xf32>
    %c240_i32 = arith.constant 240 : i32
    %90 = tpu.dynamic_rotate %9 by %c240_i32 dim 1 : vector<8x256xf32>, i32 -> vector<8x256xf32>
    %c15_i32_48 = arith.constant 15 : i32
    %91 = vector.broadcast %c15_i32_48 : i32 to vector<1x256xi32>
    %92 = arith.cmpi slt, %11, %91 : vector<1x256xi32>
    %cst_49 = arith.constant 0.000000e+00 : f32
    %93 = vector.shape_cast %92 : vector<1x256xi1> to vector<1x256xi1>
    %94 = vector.broadcast %93 : vector<1x256xi1> to vector<8x256xi1>
    %95 = vector.broadcast %cst_49 : f32 to vector<8x256xf32>
    %96 = arith.select %94, %90, %95 : vector<8x256xi1>, vector<8x256xf32>
    %c7 = arith.constant 7 : index
    %c0_50 = arith.constant 0 : index
    %c0_51 = arith.constant 0 : index
    %97 = vector.load %arg4[%c7, %c0_50, %c0_51] : memref<9x8x8xf32, #tpu.memory_space<vmem>>, vector<1x8x8xf32>
    %98 = vector.shape_cast %97 : vector<1x8x8xf32> to vector<8x8xf32>
    %cst_52 = arith.constant dense<0.000000e+00> : vector<8x256xf32>
    %99 = tpu.matmul %98, %96, %cst_52 {dimension_numbers = #tpu.dot_dimension_numbers<[1], [0], [0], [1], [0, 0, 1, 1], [], []>} : vector<8x8xf32>, vector<8x256xf32>, vector<8x256xf32> -> vector<8x256xf32>
    %100 = arith.addf %89, %99 : vector<8x256xf32>
    %c239_i32 = arith.constant 239 : i32
    %101 = tpu.dynamic_rotate %9 by %c239_i32 dim 1 : vector<8x256xf32>, i32 -> vector<8x256xf32>
    %c15_i32_53 = arith.constant 15 : i32
    %102 = vector.broadcast %c15_i32_53 : i32 to vector<1x256xi32>
    %103 = arith.cmpi slt, %10, %102 : vector<1x256xi32>
    %c15_i32_54 = arith.constant 15 : i32
    %104 = vector.broadcast %c15_i32_54 : i32 to vector<1x256xi32>
    %105 = arith.cmpi slt, %11, %104 : vector<1x256xi32>
    %106 = arith.andi %103, %105 : vector<1x256xi1>
    %cst_55 = arith.constant 0.000000e+00 : f32
    %107 = vector.shape_cast %106 : vector<1x256xi1> to vector<1x256xi1>
    %108 = vector.broadcast %107 : vector<1x256xi1> to vector<8x256xi1>
    %109 = vector.broadcast %cst_55 : f32 to vector<8x256xf32>
    %110 = arith.select %108, %101, %109 : vector<8x256xi1>, vector<8x256xf32>
    %c8 = arith.constant 8 : index
    %c0_56 = arith.constant 0 : index
    %c0_57 = arith.constant 0 : index
    %111 = vector.load %arg4[%c8, %c0_56, %c0_57] : memref<9x8x8xf32, #tpu.memory_space<vmem>>, vector<1x8x8xf32>
    %112 = vector.shape_cast %111 : vector<1x8x8xf32> to vector<8x8xf32>
    %cst_58 = arith.constant dense<0.000000e+00> : vector<8x256xf32>
    %113 = tpu.matmul %112, %110, %cst_58 {dimension_numbers = #tpu.dot_dimension_numbers<[1], [0], [0], [1], [0, 0, 1, 1], [], []>} : vector<8x8xf32>, vector<8x256xf32>, vector<8x256xf32> -> vector<8x256xf32>
    %114 = arith.addf %100, %113 : vector<8x256xf32>
    %c0_59 = arith.constant 0 : index
    %c0_60 = arith.constant 0 : index
    %115 = vector.load %arg5[%c0_59, %c0_60] : memref<8x1xf32, #tpu.memory_space<vmem>>, vector<8x1xf32>
    %116 = vector.broadcast %115 : vector<8x1xf32> to vector<8x256xf32>
    %117 = arith.addf %114, %116 : vector<8x256xf32>
    %cst_61 = arith.constant 1.000000e-01 : f32
    %118 = vector.broadcast %cst_61 : f32 to vector<8x256xf32>
    %119 = arith.mulf %118, %117 : vector<8x256xf32>
    %120 = arith.maximumf %117, %119 : vector<8x256xf32>
    %121 = arith.addf %120, %1 : vector<8x256xf32>
    %c0_62 = arith.constant 0 : index
    %c0_63 = arith.constant 0 : index
    %c0_64 = arith.constant 0 : index
    %122 = vector.load %arg7[%c0_62, %c0_63, %c0_64] : memref<1x8x256xf32, #tpu.memory_space<vmem>>, vector<1x8x256xf32>
    %123 = vector.shape_cast %122 : vector<1x8x256xf32> to vector<8x256xf32>
    %124 = vector.shape_cast %121 : vector<8x256xf32> to vector<1x8x256xf32>
    tpu.vector_store %arg7[%c0_62, %c0_63, %c0_64], %124 {strides = array<i32>} : memref<1x8x256xf32, #tpu.memory_space<vmem>>, vector<1x8x256xf32>,
    return
  }
  func.func @transform_0(%arg0: i32) -> (i32, i32, i32) {
    %c0_i32 = arith.constant 0 : i32
    %c0_i32_0 = arith.constant 0 : i32
    %c0_i32_1 = arith.constant 0 : i32
    return %arg0, %c0_i32, %c0_i32_0 : i32, i32, i32
  }
  func.func @transform_1(%arg0: i32) -> (i32, i32) {
    %c0_i32 = arith.constant 0 : i32
    %c0_i32_0 = arith.constant 0 : i32
    %c0_i32_1 = arith.constant 0 : i32
    return %c0_i32, %c0_i32_0 : i32, i32
  }
  func.func @transform_2(%arg0: i32) -> (i32, i32) {
    %c0_i32 = arith.constant 0 : i32
    %c0_i32_0 = arith.constant 0 : i32
    %c0_i32_1 = arith.constant 0 : i32
    return %c0_i32, %c0_i32_0 : i32, i32
  }
  func.func @transform_3(%arg0: i32) -> (i32, i32, i32) {
    %c0_i32 = arith.constant 0 : i32
    %c0_i32_0 = arith.constant 0 : i32
    %c0_i32_1 = arith.constant 0 : i32
    %c0_i32_2 = arith.constant 0 : i32
    return %c0_i32, %c0_i32_0, %c0_i32_1 : i32, i32, i32
  }
  func.func @transform_4(%arg0: i32) -> (i32, i32) {
    %c0_i32 = arith.constant 0 : i32
    %c0_i32_0 = arith.constant 0 : i32
    %c0_i32_1 = arith.constant 0 : i32
    return %c0_i32, %c0_i32_0 : i32, i32
  }
  func.func @transform_5(%arg0: i32) -> (i32, i32) {
    %c0_i32 = arith.constant 0 : i32
    %c0_i32_0 = arith.constant 0 : i32
    %c0_i32_1 = arith.constant 0 : i32
    return %c0_i32, %c0_i32_0 : i32, i32
  }
  func.func @transform_6(%arg0: i32) -> (i32, i32, i32) {
    %c0_i32 = arith.constant 0 : i32
    %c0_i32_0 = arith.constant 0 : i32
    %c0_i32_1 = arith.constant 0 : i32
    return %arg0, %c0_i32, %c0_i32_0 : i32, i32, i32
  }
}

</mosaic_0001>

<bundles_post_ra>
// kernel: apply.1
= control target key start
LH: loop header
LB: loop body
LE: loop exit
PB: predicated region body
PF: predicated region fallthrough
CT: control target
= control target key end

     0   :  { %s1052_s21 = smov 0   ;;  %s1198_s0 = inlined_call_operand.vmem [shape: f32[2,8,256], index: 0, kind: input, shape index: {}]   ;;  %s1199_s1 = inlined_call_operand.vmem [shape: f32[8,8], index: 1, kind: input, shape index: {}]   ;;  %s1200_s2 = inlined_call_operand.vmem [shape: f32[8,1], index: 2, kind: input, shape index: {}]   ;;  %s1201_s3 = inlined_call_operand.vmem [shape: f32[9,8,8], index: 3, kind: input, shape index: {}]   ;;  %s1202_s4 = inlined_call_operand.vmem [shape: f32[8,1], index: 4, kind: input, shape index: {}]   ;;  %s1203_s5 = inlined_call_operand.vmem [shape: s32[2,256], index: 5, kind: input, shape index: {}]   ;;  %s1204_s6 = inlined_call_operand.vmem [shape: f32[2,8,256], index: 6, kind: output, shape index: {}]  }
   0x1 LB: > { %s923_s22 = sadd.s32 4294967295, %s1006_s21   ;;  %p927_p0 = scmp.ge.s32.totalorder %s1006_s21, 1  ;;  %s1006_s21 = sphi %s1052_s21, %s16_s21  }
   0x2   : > { %p212_p1 = scmp.lt.s32.totalorder %s1006_s21, 3 }
   0x4   : > { %p213_p2 = pnand %p927_p0, %p212_p1 }
   0x5   : > { %p242_p3 = scmp.lt.s32.totalorder (!%p213_p2), %s923_s22, 1  ;;  %s1009_s7 = smov (!%p213_p2), 16  }
   0x6   : > { %216 = sbr.rel (%p213_p2) target bundleno = 446 (0x1be), region = 44  ;;  %s1010_s8 = smov (!%p213_p2), 17  }
   0x7   : > { %s1011_s9 = smov (!%p213_p2), 1   ;;  %s1012_s10 = smov (!%p213_p2), 15  }
   0x8   : > { %s1013_s11 = smov (!%p213_p2), 113   ;;  %s1014_s12 = smov (!%p213_p2), 127  }
   0x9   : > { %s1015_s13 = smov (!%p213_p2), 111   ;;  %s1016_s14 = smov (!%p213_p2), 112  }
   0xb   : > { %v255_v0 = vld [vmem:[%s1200_s2] sm:$0xff]  ;;  %v1008_v1 = vmov 0   ;;  %s1206_s22 = smov (!%p242_p3, %s923_s22), 1  ;;  %vm261_vm0 = vcmask 64512   ;;  %v318_v17 = vlaneseq  ;;  %v942_v40 = vld [vmem:[%s1201_s3 + $0x8] sm:$0xff]  ;;  %v947_v48 = vld [vmem:[%s1201_s3 + $0x10] sm:$0xff] }
   0xc   : > { %998 = vset.pattern.permute.xlu0 %v1008_v1  ;;  %999 = vset.pattern.permute.xlu2 %v1008_v1  ;;  %s979_s25 = sshll.u32 %s1206_s22, 4  ;;  %v254_v2 = vld [vmem:[%s1199_s1] sm:$0xff]  ;;  %v952_v53 = vld [vmem:[%s1201_s3 + $0x18] sm:$0xff] }
   0xd   : > { %258 = vperm.xlu0 %998, %v255_v0   ;;  %s246_s28 = scalar_lea.vmem %s1198_s0, %s979_s25  ;;  %v935_v14 = vld [vmem:[%s1201_s3 + $0x20] sm:$0xff]  ;;  %v1106_v20 = vand.u32 127, %v318_v17  ;;  %s251_s20 = scalar_lea.vmem %s1204_s6, %s979_s25 }
   0xe   : > { %v1076_v3 = vld [vmem:[%s246_s28] sm:$0xff]  ;;  %v1078_v4 = vld [vmem:[%s246_s28 + $0x8] sm:$0xff] }
   0xf   : > { %280 = vmatpush.msra.mxu0 %v1076_v3  ;;  %300 = vmatpush.msra.mxu1 %v1078_v4  ;;  %v1092_v15 = vld [vmem:[%s1203_s5] ss:$2 sm:$0x3]  ;;  %v1097_v16 = vld [vmem:[%s1203_s5 + $0x1] ss:$2 sm:$0x3] }
  0x10   : > { %932 = vmatmul.msk.f32.vlgmr.msra.gmra.mxu0 %vm261_vm0, %v254_v2  ;;  %933 = vmatmul.msk.f32.vlgmr.msra.gmra.mxu1 %vm261_vm0, %v254_v2  ;;  %vm323_vm1 = vcmp.ge.s32.totalorder %v1092_v15, 1  ;;  %vm324_vm2 = vcmp.ge.s32.totalorder %v1097_v16, 1  ;;  %vm320_vm4 = vcmp.lt.s32.totalorder %v1106_v20, 17  ;;  %v333_v26 = vld [vmem:[%s1201_s3] sm:$0xff]  ;;  %vm488_vm7 = vcmp.lt.s32.totalorder %v1092_v15, 15  ;;  %v962_v2 = vld [vmem:[%s1201_s3 + $0x30] sm:$0xff] }
  0x11   : > { %vm325_vm3 = vmand %vm323_vm1, %vm324_vm2  ;;  %v427_v24 = vsel %vm324_vm2, 1, %v1008_v1  ;;  %v551_v27 = vsel %vm323_vm1, 1, %v1008_v1  ;;  %vm424_vm9 = vcmp.lt.s32.totalorder %v1106_v20, 16  ;;  %vm548_vm10 = vcmp.lt.s32.totalorder %v1106_v20, 1  ;;  %v852_v45 = vld [vmem:[%s1202_s4] sm:$0xff] }
  0x12   : > { %v326_v19 = vsel %vm325_vm3, 1, %v1008_v1  ;;  %v428_v31 = vperm.slane %v427_v24, 0  ;;  %v429_v32 = vperm.slane %v427_v24, 1  ;;  %v552_v33 = vperm.slane %v551_v27, 0  ;;  %vm489_vm8 = vmand %vm488_vm7, %vm324_vm2  ;;  %v972_v15 = vld [vmem:[%s1201_s3 + $0x40] sm:$0xff] }
  0x13   : > { %v327_v21 = vperm.slane %v326_v19, 0  ;;  %v328_v22 = vperm.slane %v326_v19, 1  ;;  %v553_v34 = vperm.slane %v551_v27, 1  ;;  %v490_v36 = vsel %vm489_vm8, 1, %v1008_v1  ;;  %v967_v19 = vld [vmem:[%s1201_s3 + $0x38] sm:$0xff] }
  0x14   : > { %vm430_vm11 = vcmp.eq.s32.totalorder %v428_v31, 1  ;;  %vm431_vm12 = vcmp.eq.s32.totalorder %v429_v32, 1  ;;  %vm554_vm13 = vcmp.eq.s32.totalorder %v552_v33, 1  ;;  %vm673_vm15 = vcmp.lt.s32.totalorder %v1097_v16, 15 }
  0x15   : > { %vm329_vm5 = vcmp.eq.s32.totalorder %v327_v21, 1  ;;  %vm330_vm6 = vcmp.eq.s32.totalorder %v328_v22, 1  ;;  %vm555_vm14 = vcmp.eq.s32.totalorder %v553_v34, 1  ;;  %v491_v43 = vperm.slane %v490_v36, 0  ;;  %vm674_vm2 = vmand %vm323_vm1, %vm673_vm15 }
  0x16   : > { %v492_v44 = vperm.slane %v490_v36, 1  ;;  %vm485_vm3 = vcmp.lt.s32.totalorder %v1106_v20, 15  ;;  %v675_v49 = vsel %vm674_vm2, 1, %v1008_v1  ;;  %v612_v54 = vsel %vm488_vm7, 1, %v1008_v1  ;;  %vm797_vm1 = vmand %vm488_vm7, %vm673_vm15 }
  0x17   : > { %v676_v55 = vperm.slane %v675_v49, 0  ;;  %v677_v56 = vperm.slane %v675_v49, 1  ;;  %v613_v57 = vperm.slane %v612_v54, 0  ;;  %v614_v58 = vperm.slane %v612_v54, 1 }
  0x18   : > { %vm609_vm8 = vcmp.lt.s32.totalorder %v1106_v20, 127  ;;  %v798_v61 = vsel %vm797_vm1, 1, %v1008_v1  ;;  %vm794_vm7 = vcmp.lt.s32.totalorder %v1106_v20, 111  ;;  %vm733_vm2 = vcmp.lt.s32.totalorder %v1106_v20, 112 }
  0x7f   : > { %v259_v5 = vpop.permute.xlu0 %258 }
  0x8d   : > { %v282_v6 = vpop.f32.mrf.mxu0  ;;  %v302_v7 = vpop.f32.mrf.mxu1 }
  0x8e   : > { %v283_v8 = vadd.f32 %v282_v6, %v259_v5  ;;  %v303_v9 = vadd.f32 %v302_v7, %v259_v5  ;;  %v957_v7 = vld [vmem:[%s1201_s3 + $0x28] sm:$0xff] }
  0x90   : > { %v305_v10 = vmul.f32 0.1, %v283_v8  ;;  %v306_v11 = vmul.f32 0.1, %v303_v9 }
  0x92   : > { %v307_v12 = vmax.f32 %v283_v8, %v305_v10  ;;  %v308_v13 = vmax.f32 %v303_v9, %v306_v11  ;;  %v799_v8 = vperm.slane %v798_v61, 0  ;;  %v800_v9 = vperm.slane %v798_v61, 1 }
  0x94   : > { %422 = vrot.lane.b32.xlu2 %v308_v13, %s1009_s7  ;;  %316 = vrot.lane.b32.xlu1 %v308_v13, %s1010_s8 }
  0x95   : > { %415 = vmatpush.msrb.mxu1 %v308_v13  ;;  %314 = vrot.lane.b32.xlu0 %v307_v12, %s1010_s8 }
  0x96   : > { %395 = vmatpush.msrb.mxu0 %v307_v12  ;;  %941 = vmatmul.msk.f32.vlgmr.msrb.gmra.mxu1 %vm261_vm0, %v935_v14 }
  0x97   : > { %940 = vmatmul.msk.f32.vlgmr.msrb.gmra.mxu0 %vm261_vm0, %v935_v14 }
  0x9c   : > { %544 = vrot.lane.b32.xlu2 %v307_v12, %s1011_s9  ;;  %420 = vrot.lane.b32.xlu1 %v307_v12, %s1009_s7 }
  0x9d   : > { %546 = vrot.lane.b32.xlu0 %v308_v13, %s1011_s9 }
  0xa4   : > { %483 = vrot.lane.b32.xlu2 %v308_v13, %s1012_s10  ;;  %481 = vrot.lane.b32.xlu1 %v307_v12, %s1012_s10 }
  0xa5   : > { %666 = vrot.lane.b32.xlu0 %v307_v12, %s1013_s11 }
  0xac   : > { %605 = vrot.lane.b32.xlu2 %v307_v12, %s1014_s12  ;;  %668 = vrot.lane.b32.xlu1 %v308_v13, %s1013_s11 }
  0xad   : > { %607 = vrot.lane.b32.xlu0 %v308_v13, %s1014_s12 }
  0xb4   : > { %792 = vrot.lane.b32.xlu2 %v308_v13, %s1015_s13  ;;  %790 = vrot.lane.b32.xlu1 %v307_v12, %s1015_s13 }
  0xb5   : > { %729 = vrot.lane.b32.xlu0 %v307_v12, %s1016_s14  ;;  %v736_v12 = vsel %vm673_vm15, 1, %v1008_v1 }
  0xb6   : > { %v737_v17 = vperm.slane %v736_v12, 0 }
  0xbc   : > { %731 = vrot.lane.b32.xlu1 %v308_v13, %s1016_s14  ;;  %855 = vperm.xlu2 %999, %v852_v45  }
  0xee   : > { %v423_v18 = vpop.permute.xlu2 %422 }
  0xf6   : > { %v545_v28 = vpop.permute.xlu2 %544 }
  0xfe   : > { %v484_v46 = vpop.permute.xlu2 %483 }
 0x106   : > { %v317_v23 = vpop.permute.xlu1 %316  ;;  %v606_v59 = vpop.permute.xlu2 %605 }
 0x107   : > { %v315_v25 = vpop.permute.xlu0 %314 }
 0x108   : > { %v322_v29 = vsel %vm320_vm4, %v317_v23, %v315_v25  ;;  %v321_v30 = vsel %vm320_vm4, %v315_v25, %v317_v23  ;;  %vm493_vm4 = vcmp.eq.s32.totalorder %v491_v43, 1 }
 0x109   : > { %936 = vmatpush.msk.msra.mxu2 %vm329_vm5, %v322_v29  ;;  %938 = vmatpush.msk.msra.mxu3 %vm330_vm6, %v321_v30  ;;  %vm494_vm5 = vcmp.eq.s32.totalorder %v492_v44, 1  ;;  %vm670_vm6 = vcmp.lt.s32.totalorder %v1106_v20, 113 }
 0x10a   : > { %937 = vmatmul.msk.f32.vlgmr.msra.gmra.mxu2 %vm261_vm0, %v333_v26  ;;  %939 = vmatmul.msk.f32.vlgmr.msra.gmra.mxu3 %vm261_vm0, %v333_v26 }
 0x10e   : > { %v421_v35 = vpop.permute.xlu1 %420  ;;  %v793_v10 = vpop.permute.xlu2 %792 }
 0x10f   : > { %v547_v37 = vpop.permute.xlu0 %546  ;;  %v426_v38 = vsel %vm424_vm9, %v423_v18, %v421_v35  ;;  %v425_v39 = vsel %vm424_vm9, %v421_v35, %v423_v18  ;;  %vm678_vm9 = vcmp.eq.s32.totalorder %v676_v55, 1  ;;  %v738_v18 = vperm.slane %v736_v12, 1 }
 0x110   : > { %v549_v41 = vsel %vm548_vm10, %v545_v28, %v547_v37  ;;  %v550_v42 = vsel %vm548_vm10, %v547_v37, %v545_v28  ;;  %943 = vmatpush.msk.msrb.mxu2 %vm430_vm11, %v426_v38  ;;  %945 = vmatpush.msk.msrb.mxu3 %vm431_vm12, %v425_v39  ;;  %vm679_vm10 = vcmp.eq.s32.totalorder %v677_v56, 1  ;;  %vm615_vm11 = vcmp.eq.s32.totalorder %v613_v57, 1 }
 0x111   : > { %vm616_vm12 = vcmp.eq.s32.totalorder %v614_v58, 1 }
 0x112   : > { %953 = vmatpush.msk.msra.mxu2 %vm554_vm13, %v550_v42  ;;  %955 = vmatpush.msk.msra.mxu3 %vm555_vm14, %v549_v41  ;;  %vm801_vm13 = vcmp.eq.s32.totalorder %v799_v8, 1  ;;  %vm802_vm14 = vcmp.eq.s32.totalorder %v800_v9, 1 }
 0x113   : > { %944 = vmatmul.msk.f32.vlgmr.msrb.gmra.mxu2 %vm261_vm0, %v942_v40  ;;  %946 = vmatmul.msk.f32.vlgmr.msrb.gmra.mxu3 %vm261_vm0, %v942_v40  ;;  %v417_v20 = vpop.f32.mrf.mxu1 }
 0x114   : > { %v397_v25 = vpop.f32.mrf.mxu0 }
 0x116   : > { %v482_v47 = vpop.permute.xlu1 %481  ;;  %v856_v54 = vpop.permute.xlu2 %855 }
 0x117   : > { %v486_v50 = vsel %vm485_vm3, %v482_v47, %v484_v46  ;;  %v487_v51 = vsel %vm485_vm3, %v484_v46, %v482_v47  ;;  %v667_v52 = vpop.permute.xlu0 %666  ;;  %vm739_vm3 = vcmp.eq.s32.totalorder %v737_v17, 1 }
 0x118   : > { %948 = vmatpush.msk.msra.mxu0 %vm493_vm4, %v487_v51  ;;  %950 = vmatpush.msk.msra.mxu1 %vm494_vm5, %v486_v50  ;;  %vm740_vm4 = vcmp.eq.s32.totalorder %v738_v18, 1 }
 0x119   : > { %949 = vmatmul.msk.f32.vlgmr.msra.gmra.mxu0 %vm261_vm0, %v947_v48  ;;  %951 = vmatmul.msk.f32.vlgmr.msra.gmra.mxu1 %vm261_vm0, %v947_v48 }
 0x11b   : > { %954 = vmatmul.msk.f32.vlgmr.msra.gmra.mxu2 %vm261_vm0, %v952_v53  ;;  %956 = vmatmul.msk.f32.vlgmr.msra.gmra.mxu3 %vm261_vm0, %v952_v53 }
 0x11e   : > { %v669_v60 = vpop.permute.xlu1 %668 }
 0x11f   : > { %v671_v62 = vsel %vm670_vm6, %v667_v52, %v669_v60  ;;  %v672_v63 = vsel %vm670_vm6, %v669_v60, %v667_v52  ;;  %v608_v0 = vpop.permute.xlu0 %607 }
 0x120   : > { %v610_v5 = vsel %vm609_vm8, %v606_v59, %v608_v0  ;;  %v611_v6 = vsel %vm609_vm8, %v608_v0, %v606_v59  ;;  %963 = vmatpush.msk.msrb.mxu2 %vm678_vm9, %v671_v62  ;;  %965 = vmatpush.msk.msrb.mxu3 %vm679_vm10, %v672_v63 }
 0x121   : > { %958 = vmatpush.msk.msrb.mxu0 %vm615_vm11, %v610_v5  ;;  %960 = vmatpush.msk.msrb.mxu1 %vm616_vm12, %v611_v6 }
 0x122   : > { %959 = vmatmul.msk.f32.vlgmr.msrb.gmra.mxu0 %vm261_vm0, %v957_v7  ;;  %961 = vmatmul.msk.f32.vlgmr.msrb.gmra.mxu1 %vm261_vm0, %v957_v7 }
 0x123   : > { %964 = vmatmul.msk.f32.vlgmr.msrb.gmra.mxu2 %vm261_vm0, %v962_v2  ;;  %966 = vmatmul.msk.f32.vlgmr.msrb.gmra.mxu3 %vm261_vm0, %v962_v2 }
 0x126   : > { %v791_v11 = vpop.permute.xlu1 %790 }
 0x127   : > { %v795_v13 = vsel %vm794_vm7, %v791_v11, %v793_v10  ;;  %v796_v14 = vsel %vm794_vm7, %v793_v10, %v791_v11  ;;  %v730_v16 = vpop.permute.xlu0 %729 }
 0x128   : > { %973 = vmatpush.msk.msra.mxu2 %vm801_vm13, %v795_v13  ;;  %975 = vmatpush.msk.msra.mxu3 %vm802_vm14, %v796_v14 }
 0x12b   : > { %974 = vmatmul.msk.f32.vlgmr.msra.gmra.mxu2 %vm261_vm0, %v972_v15  ;;  %976 = vmatmul.msk.f32.vlgmr.msra.gmra.mxu3 %vm261_vm0, %v972_v15 }
 0x12e   : > { %v732_v1 = vpop.permute.xlu1 %731 }
 0x12f   : > { %v734_v21 = vsel %vm733_vm2, %v730_v16, %v732_v1  ;;  %v735_v22 = vsel %vm733_vm2, %v732_v1, %v730_v16 }
 0x130   : > { %968 = vmatpush.msk.msra.mxu0 %vm739_vm3, %v734_v21  ;;  %970 = vmatpush.msk.msra.mxu1 %vm740_vm4, %v735_v22 }
 0x131   : > { %969 = vmatmul.msk.f32.vlgmr.msra.gmra.mxu0 %vm261_vm0, %v967_v19  ;;  %971 = vmatmul.msk.f32.vlgmr.msra.gmra.mxu1 %vm261_vm0, %v967_v19 }
 0x18d   : > { %v354_v23 = vpop.f32.mrf.mxu2  ;;  %v374_v24 = vpop.f32.mrf.mxu3 }
 0x18e   : > { %v398_v32 = vadd.f32 %v397_v25, %v354_v23  ;;  %v418_v33 = vadd.f32 %v417_v20, %v374_v24 }
 0x196   : > { %v456_v26 = vpop.f32.mrf.mxu2  ;;  %v476_v27 = vpop.f32.mrf.mxu3 }
 0x197   : > { %v519_v28 = vpop.f32.mrf.mxu0  ;;  %v539_v29 = vpop.f32.mrf.mxu1  ;;  %v479_v34 = vadd.f32 %v456_v26, %v398_v32  ;;  %v480_v35 = vadd.f32 %v476_v27, %v418_v33 }
 0x199   : > { %v542_v36 = vadd.f32 %v519_v28, %v479_v34  ;;  %v543_v37 = vadd.f32 %v539_v29, %v480_v35 }
 0x19e   : > { %v580_v30 = vpop.f32.mrf.mxu2  ;;  %v600_v31 = vpop.f32.mrf.mxu3 }
 0x19f   : > { %v641_v40 = vpop.f32.mrf.mxu0  ;;  %v661_v41 = vpop.f32.mrf.mxu1  ;;  %v603_v42 = vadd.f32 %v580_v30, %v542_v36  ;;  %v604_v43 = vadd.f32 %v600_v31, %v543_v37 }
 0x1a1   : > { %v664_v44 = vadd.f32 %v641_v40, %v603_v42  ;;  %v665_v45 = vadd.f32 %v661_v41, %v604_v43 }
 0x1a6   : > { %v704_v38 = vpop.f32.mrf.mxu2  ;;  %v724_v39 = vpop.f32.mrf.mxu3 }
 0x1a7   : > { %v727_v46 = vadd.f32 %v704_v38, %v664_v44  ;;  %v728_v47 = vadd.f32 %v724_v39, %v665_v45 }
 0x1ae   : > { %v827_v48 = vpop.f32.mrf.mxu2  ;;  %v847_v49 = vpop.f32.mrf.mxu3 }
 0x1af   : > { %v765_v50 = vpop.f32.mrf.mxu0  ;;  %v785_v51 = vpop.f32.mrf.mxu1 }
 0x1b0   : > { %v788_v52 = vadd.f32 %v765_v50, %v727_v46  ;;  %v789_v53 = vadd.f32 %v785_v51, %v728_v47 }
 0x1b2   : > { %v850_v55 = vadd.f32 %v827_v48, %v788_v52  ;;  %v851_v56 = vadd.f32 %v847_v49, %v789_v53 }
 0x1b4   : > { %v858_v57 = vadd.f32 %v856_v54, %v850_v55  ;;  %v859_v58 = vadd.f32 %v856_v54, %v851_v56 }
 0x1b6   : > { %v860_v59 = vmul.f32 0.1, %v858_v57  ;;  %v861_v60 = vmul.f32 0.1, %v859_v58 }
 0x1b8   : > { %v862_v61 = vmax.f32 %v858_v57, %v860_v59  ;;  %v863_v62 = vmax.f32 %v859_v58, %v861_v60 }
 0x1ba   : > { %v864_v63 = vadd.f32 %v862_v61, %v1076_v3  ;;  %v865_v0 = vadd.f32 %v863_v62, %v1078_v4 }
 0x1bc   : > { %866 = vst [vmem:[%s251_s20] sm:$0xff] %v864_v63 }
 0x1bd   : > { %867 = vst [vmem:[%s251_s20 + $0x8] sm:$0xff] %v865_v0 }
 0x1be PF: > { %s16_s21 = sadd.s32 1, %s1006_s21  }
 0x1bf   : > { %p13_p4 = scmp.ge.s32.totalorder %s16_s21, 4  }
 0x1c1   :  { %15 = sbr.rel (!%p13_p4) target bundleno = 1 (0x1), region = 83 }

</bundles_post_ra>
